<compile_context>
chip_gen: v5e
topology: v5e:2x2
jax: 0.10.0
libtpu: 0.0.40
codegen_flags: <defaults>
</compile_context>

<pallas_src>
import functools

import jax
import jax.numpy as jnp
from jax.experimental import pallas as pl
from jax.experimental.pallas import tpu as pltpu

D_MODEL = 32
D_HIDDEN = 64
PACK = 4                      # logical rows packed per 128-lane row
D_PACK = PACK * D_MODEL       # 128
H_PACK = PACK * D_HIDDEN      # 256
LN_EPS = 1e-5


def _ffn_kernel(x_ref, avg_ref, w1_ref, b1_ref, w2_ref, b2_ref, o_ref):
    # x_ref: (TM, 128) tile; each 128-lane row holds 4 logical 32-feature rows.
    x = x_ref[...].astype(jnp.float32)
    avg = avg_ref[...]                      # (128,128) block-diag of 1/32

    # --- LayerNorm per 32-lane segment (mean/var broadcast via MXU matmul) ---
    mu = jnp.dot(x, avg, preferred_element_type=jnp.float32)
    xc = x - mu
    var = jnp.dot(xc * xc, avg, preferred_element_type=jnp.float32)
    xhat = xc * jax.lax.rsqrt(var + LN_EPS)

    # --- Linear(32 -> 64) x4 via block-diagonal (128 -> 256) + ReLU ---
    # (gamma/beta already folded into w1/b1 by the wrapper)
    h = jnp.dot(xhat, w1_ref[...], preferred_element_type=jnp.float32) + b1_ref[...]
    h = jnp.maximum(h, 0.0)

    # --- Linear(64 -> 32) x4 via block-diagonal (256 -> 128) + residual ---
    out = jnp.dot(h, w2_ref[...], preferred_element_type=jnp.float32) + b2_ref[...]
    o_ref[...] = (out + x).astype(o_ref.dtype)


def _round_up(x, m):
    return ((x + m - 1) // m) * m


def _block_diag(w, pack):
    """(din, dout) -> (pack*din, pack*dout) block-diagonal."""
    din, dout = w.shape
    eye = jnp.eye(pack, dtype=w.dtype)
    return jnp.einsum('pq,io->piqo', eye, w).reshape(pack * din, pack * dout)


@functools.partial(jax.jit, static_argnames=("tile_rows",))
def fully_connected_output(x, gamma, beta, w1, b1, w2, b2, *, tile_rows=None):
    """x: (B, S, 32) -> (B, S, 32). w1: (32,64), w2: (64,32) (already (in,out))."""
    B, S, D = x.shape
    assert D == D_MODEL
    n_rows = B * S

    # ---- choose packed-row tile (sublane multiple of 8, big, >=2 grid steps) ----
    packed_rows = pl.cdiv(n_rows, PACK)
    if tile_rows is None:
        padded8 = _round_up(packed_rows, 8)
        if padded8 <= 8:
            tile_rows = padded8
        else:
            # large tiles (up to 1024 packed rows = 512 KiB f32), but keep >=2
            # grid steps so both megacore TensorCores get work.
            tile_rows = min(1024, _round_up(pl.cdiv(padded8, 2), 8))
    grid_m = pl.cdiv(packed_rows, tile_rows)
    padded_packed = grid_m * tile_rows
    padded_rows = padded_packed * PACK

    # ---- pack rows lane-dense: (n_rows, 32) -> (padded_packed, 128) ----
    x2d = x.reshape(n_rows, D_MODEL)
    if padded_rows != n_rows:
        x2d = jnp.pad(x2d, ((0, padded_rows - n_rows), (0, 0)))
    xp = x2d.reshape(padded_packed, D_PACK)

    # ---- fold LayerNorm affine into W1/b1 (parameter-sized, exact algebra) ----
    f32 = jnp.float32
    w1_f = gamma.astype(f32)[:, None] * w1.astype(f32)              # (32, 64)
    b1_f = b1.astype(f32) + beta.astype(f32) @ w1.astype(f32)       # (64,)

    # ---- lane-dense / block-diagonal parameters ----
    b1_p = jnp.tile(b1_f, PACK).reshape(1, H_PACK)
    b2_p = jnp.tile(b2.astype(f32), PACK).reshape(1, D_PACK)
    w1_p = _block_diag(w1_f, PACK)                                  # (128, 256)
    w2_p = _block_diag(w2.astype(f32), PACK)                        # (256, 128)
    avg = _block_diag(jnp.full((D_MODEL, D_MODEL), 1.0 / D_MODEL, f32), PACK)

    outp = pl.pallas_call(
        _ffn_kernel,
        out_shape=jax.ShapeDtypeStruct((padded_packed, D_PACK), x.dtype),
        grid_spec=pltpu.PrefetchScalarGridSpec(
            num_scalar_prefetch=0,
            grid=(grid_m,),
            in_specs=[
                pl.BlockSpec((tile_rows, D_PACK), lambda i: (i, 0)),   # x rows
                pl.BlockSpec((D_PACK, D_PACK), lambda i: (0, 0)),      # avg mat
                pl.BlockSpec((D_PACK, H_PACK), lambda i: (0, 0)),      # w1
                pl.BlockSpec((1, H_PACK), lambda i: (0, 0)),           # b1
                pl.BlockSpec((H_PACK, D_PACK), lambda i: (0, 0)),      # w2
                pl.BlockSpec((1, D_PACK), lambda i: (0, 0)),           # b2
            ],
            out_specs=pl.BlockSpec((tile_rows, D_PACK), lambda i: (i, 0)),
        ),
        compiler_params=pltpu.CompilerParams(
            dimension_semantics=("parallel",)),
    )(xp, avg, w1_p, b1_p, w2_p, b2_p)

    out2d = outp.reshape(padded_rows, D_MODEL)[:n_rows]
    return out2d.reshape(B, S, D_MODEL)


def _reference(x, gamma, beta, w1, b1, w2, b2):
    x = x.astype(jnp.float32)
    mu = jnp.mean(x, axis=-1, keepdims=True)
    var = jnp.mean((x - mu) ** 2, axis=-1, keepdims=True)
    y = (x - mu) / jnp.sqrt(var + LN_EPS) * gamma + beta
    h = jnp.maximum(y @ w1 + b1, 0.0)
    out = h @ w2 + b2
    return out + x


if __name__ == "__main__":
    key = jax.random.PRNGKey(0)
    k_x, k_w1, k_b1, k_w2, k_b2, k_x2 = jax.random.split(key, 6)

    # Deterministic parameter init (uniform, PyTorch-Linear-like scaling).
    bound1 = 1.0 / (D_MODEL ** 0.5)
    bound2 = 1.0 / (D_HIDDEN ** 0.5)
    w1 = jax.random.uniform(k_w1, (D_MODEL, D_HIDDEN), jnp.float32, -bound1, bound1)
    b1 = jax.random.uniform(k_b1, (D_HIDDEN,), jnp.float32, -bound1, bound1)
    w2 = jax.random.uniform(k_w2, (D_HIDDEN, D_MODEL), jnp.float32, -bound2, bound2)
    b2 = jax.random.uniform(k_b2, (D_MODEL,), jnp.float32, -bound2, bound2)
    gamma = jnp.ones((D_MODEL,), jnp.float32)
    beta = jnp.zeros((D_MODEL,), jnp.float32)

    # Small shape consistent with the module (ragged: exercises padding path).
    B, S = 2, 8
    x = jax.random.normal(k_x, (B, S, D_MODEL), dtype=jnp.float32)
    out = jax.block_until_ready(fully_connected_output(x, gamma, beta, w1, b1, w2, b2))
    ref = _reference(x, gamma, beta, w1, b1, w2, b2)
    assert out.shape == (B, S, D_MODEL)
    assert jnp.allclose(out, ref, atol=1e-4, rtol=1e-4), "mismatch vs reference (small)"

    # Second shape: exercises the multi-step (grid >= 2) fast path.
    B2, S2 = 4, 64
    x2 = jax.random.normal(k_x2, (B2, S2, D_MODEL), dtype=jnp.float32)
    out2 = jax.block_until_ready(fully_connected_output(x2, gamma, beta, w1, b1, w2, b2))
    ref2 = _reference(x2, gamma, beta, w1, b1, w2, b2)
    assert out2.shape == (B2, S2, D_MODEL)
    assert jnp.allclose(out2, ref2, atol=1e-4, rtol=1e-4), "mismatch vs reference (grid>=2)"

    print("KERNEL_OK")
</pallas_src>

<mosaic_0001>
module attributes {stable_mosaic.version = 11 : i64} {
  func.func @_ffn_kernel(%arg0: i32, %arg1: memref<8x128xf32, #tpu.memory_space<vmem>>, %arg2: memref<128x128xf32, #tpu.memory_space<vmem>>, %arg3: memref<128x256xf32, #tpu.memory_space<vmem>>, %arg4: memref<1x256xf32, #tpu.memory_space<vmem>>, %arg5: memref<256x128xf32, #tpu.memory_space<vmem>>, %arg6: memref<1x128xf32, #tpu.memory_space<vmem>>, %arg7: memref<8x128xf32, #tpu.memory_space<vmem>>) attributes {dimension_semantics = [#tpu.dimension_semantics<parallel>], iteration_bounds = array<i64: 1>, scalar_prefetch = 0 : i64, scratch_operands = 0 : i64, tpu.core_type = #tpu.core_type<tc>, window_params = [{transform_indices = @transform_0, window_bounds = array<i64: 8, 128>}, {pipeline_mode = #tpu.pipeline_mode<synchronous>, transform_indices = @transform_1, window_bounds = array<i64: 128, 128>}, {pipeline_mode = #tpu.pipeline_mode<synchronous>, transform_indices = @transform_2, window_bounds = array<i64: 128, 256>}, {pipeline_mode = #tpu.pipeline_mode<synchronous>, transform_indices = @transform_3, window_bounds = array<i64: 1, 256>}, {pipeline_mode = #tpu.pipeline_mode<synchronous>, transform_indices = @transform_4, window_bounds = array<i64: 256, 128>}, {pipeline_mode = #tpu.pipeline_mode<synchronous>, transform_indices = @transform_5, window_bounds = array<i64: 1, 128>}, {transform_indices = @transform_6, window_bounds = array<i64: 8, 128>}]} {
    %c0 = arith.constant 0 : index
    %c0_0 = arith.constant 0 : index
    %0 = vector.load %arg1[%c0, %c0_0] : memref<8x128xf32, #tpu.memory_space<vmem>>, vector<8x128xf32>
    %c0_1 = arith.constant 0 : index
    %c0_2 = arith.constant 0 : index
    %1 = vector.load %arg2[%c0_1, %c0_2] : memref<128x128xf32, #tpu.memory_space<vmem>>, vector<128x128xf32>
    %cst = arith.constant dense<0.000000e+00> : vector<8x128xf32>
    %2 = tpu.matmul %0, %1, %cst {dimension_numbers = #tpu.dot_dimension_numbers<[1], [0], [0], [1], [0, 0, 1, 1], [], []>} : vector<8x128xf32>, vector<128x128xf32>, vector<8x128xf32> -> vector<8x128xf32>
    %3 = arith.subf %0, %2 : vector<8x128xf32>
    %4 = arith.mulf %3, %3 : vector<8x128xf32>
    %cst_3 = arith.constant dense<0.000000e+00> : vector<8x128xf32>
    %5 = tpu.matmul %4, %1, %cst_3 {dimension_numbers = #tpu.dot_dimension_numbers<[1], [0], [0], [1], [0, 0, 1, 1], [], []>} : vector<8x128xf32>, vector<128x128xf32>, vector<8x128xf32> -> vector<8x128xf32>
    %cst_4 = arith.constant 9.99999974E-6 : f32
    %6 = vector.broadcast %cst_4 : f32 to vector<8x128xf32>
    %7 = arith.addf %5, %6 : vector<8x128xf32>
    %8 = math.rsqrt %7 : vector<8x128xf32>
    %9 = arith.mulf %3, %8 : vector<8x128xf32>
    %c0_5 = arith.constant 0 : index
    %c0_6 = arith.constant 0 : index
    %10 = vector.load %arg3[%c0_5, %c0_6] : memref<128x256xf32, #tpu.memory_space<vmem>>, vector<128x256xf32>
    %cst_7 = arith.constant dense<0.000000e+00> : vector<8x256xf32>
    %11 = tpu.matmul %9, %10, %cst_7 {dimension_numbers = #tpu.dot_dimension_numbers<[1], [0], [0], [1], [0, 0, 1, 1], [], []>} : vector<8x128xf32>, vector<128x256xf32>, vector<8x256xf32> -> vector<8x256xf32>
    %c0_8 = arith.constant 0 : index
    %c0_9 = arith.constant 0 : index
    %12 = vector.load %arg4[%c0_8, %c0_9] : memref<1x256xf32, #tpu.memory_space<vmem>>, vector<1x256xf32>
    %13 = vector.broadcast %12 : vector<1x256xf32> to vector<8x256xf32>
    %14 = arith.addf %11, %13 : vector<8x256xf32>
    %cst_10 = arith.constant 0.000000e+00 : f32
    %15 = vector.broadcast %cst_10 : f32 to vector<8x256xf32>
    %16 = arith.maximumf %14, %15 : vector<8x256xf32>
    %c0_11 = arith.constant 0 : index
    %c0_12 = arith.constant 0 : index
    %17 = vector.load %arg5[%c0_11, %c0_12] : memref<256x128xf32, #tpu.memory_space<vmem>>, vector<256x128xf32>
    %cst_13 = arith.constant dense<0.000000e+00> : vector<8x128xf32>
    %18 = tpu.matmul %16, %17, %cst_13 {dimension_numbers = #tpu.dot_dimension_numbers<[1], [0], [0], [1], [0, 0, 1, 1], [], []>} : vector<8x256xf32>, vector<256x128xf32>, vector<8x128xf32> -> vector<8x128xf32>
    %c0_14 = arith.constant 0 : index
    %c0_15 = arith.constant 0 : index
    %19 = vector.load %arg6[%c0_14, %c0_15] : memref<1x128xf32, #tpu.memory_space<vmem>>, vector<1x128xf32>
    %20 = vector.broadcast %19 : vector<1x128xf32> to vector<8x128xf32>
    %21 = arith.addf %18, %20 : vector<8x128xf32>
    %22 = arith.addf %21, %0 : vector<8x128xf32>
    %c0_16 = arith.constant 0 : index
    %c0_17 = arith.constant 0 : index
    %23 = vector.load %arg7[%c0_16, %c0_17] : memref<8x128xf32, #tpu.memory_space<vmem>>, vector<8x128xf32>
    tpu.vector_store %arg7[%c0_16, %c0_17], %22 {strides = array<i32>} : memref<8x128xf32, #tpu.memory_space<vmem>>, vector<8x128xf32>,
    return
  }
  func.func @transform_0(%arg0: i32) -> (i32, i32) {
    %c0_i32 = arith.constant 0 : i32
    %c0_i32_0 = arith.constant 0 : i32
    return %arg0, %c0_i32 : i32, i32
  }
  func.func @transform_1(%arg0: i32) -> (i32, i32) {
    %c0_i32 = arith.constant 0 : i32
    %c0_i32_0 = arith.constant 0 : i32
    %c0_i32_1 = arith.constant 0 : i32
    return %c0_i32, %c0_i32_0 : i32, i32
  }
  func.func @transform_2(%arg0: i32) -> (i32, i32) {
    %c0_i32 = arith.constant 0 : i32
    %c0_i32_0 = arith.constant 0 : i32
    %c0_i32_1 = arith.constant 0 : i32
    return %c0_i32, %c0_i32_0 : i32, i32
  }
  func.func @transform_3(%arg0: i32) -> (i32, i32) {
    %c0_i32 = arith.constant 0 : i32
    %c0_i32_0 = arith.constant 0 : i32
    %c0_i32_1 = arith.constant 0 : i32
    return %c0_i32, %c0_i32_0 : i32, i32
  }
  func.func @transform_4(%arg0: i32) -> (i32, i32) {
    %c0_i32 = arith.constant 0 : i32
    %c0_i32_0 = arith.constant 0 : i32
    %c0_i32_1 = arith.constant 0 : i32
    return %c0_i32, %c0_i32_0 : i32, i32
  }
  func.func @transform_5(%arg0: i32) -> (i32, i32) {
    %c0_i32 = arith.constant 0 : i32
    %c0_i32_0 = arith.constant 0 : i32
    %c0_i32_1 = arith.constant 0 : i32
    return %c0_i32, %c0_i32_0 : i32, i32
  }
  func.func @transform_6(%arg0: i32) -> (i32, i32) {
    %c0_i32 = arith.constant 0 : i32
    %c0_i32_0 = arith.constant 0 : i32
    return %arg0, %c0_i32 : i32, i32
  }
}

</mosaic_0001>

<bundles_post_ra>
// kernel: tile.13
= control target key start
LH: loop header
LB: loop body
LE: loop exit
PB: predicated region body
PF: predicated region fallthrough
CT: control target
= control target key end

     0   :  { %s22_s0 = inlined_call_operand.vmem [shape: f32[64], index: 0, kind: input, shape index: {}]   ;;  %s23_s1 = inlined_call_operand.vmem [shape: f32[4,64], index: 1, kind: output, shape index: {}]  }
   0x1   :  { %v4_v0 = vld [vmem:[%s22_s0] ss:$0 sm:$0xff] }
   0x2   :  { %5 = vst [vmem:[%s23_s1] sm:$0xf] %v4_v0 }

// kernel: tile.14
= control target key start
LH: loop header
LB: loop body
LE: loop exit
PB: predicated region body
PF: predicated region fallthrough
CT: control target
= control target key end

     0   :  { %s6_s8 = smov 3  ;;  %vm8_vm0 = vcmask 523264   ;;  %s31_s9 = smov 64   ;;  %vm15_vm1 = vcmask 1048064   ;;  %s51_s0 = inlined_call_operand.vmem [shape: f32[4,64], index: 0, kind: input, shape index: {}]   ;;  %s52_s1 = inlined_call_operand.vmem [shape: f32[1,256], index: 1, kind: output, shape index: {}]  }
   0x1   :  { %v4_v0 = vld [vmem:[%s51_s0] sm:$0xf]  ;;  %s11_s0 = smov 3 }
   0x2   :  { %5 = vst [vmem:[#allocation1] sm:$0xf] %v4_v0 }
   0x9   :  { %v12_v1 = vld [vmem:[#allocation1 + $0x1] ss:$2 sm:%s11_s0]   ;;  %v7_v2 = vld [vmem:[#allocation1] ss:$2 sm:%s6_s8]  }
   0xa   :  { %13 = vrot.lane.b32.xlu0 %v12_v1, %s31_s9  ;;  %9 = vst.msk [vmem:[#allocation0] ss:$8 sm:$0x3] %vm8_vm0, %v7_v2  }
  0x7c   :  { %v14_v3 = vpop.permute.xlu0 %13  }
  0x7d   :  { %16 = vst.msk [vmem:[#allocation0] ss:$8 sm:$0x3] %vm15_vm1, %v14_v3  }
  0x84   :  { %v19_v4 = vld [vmem:[#allocation0] sm:$0x1]  ;;  %v24_v5 = vld [vmem:[#allocation0 + $0x8] sm:$0x1] }
  0x85   :  { %22 = vst [vmem:[%s52_s1] sm:$0x1] %v19_v4 }
  0x86   :  { %29 = vst [vmem:[%s52_s1 + $0x1] sm:$0x1] %v24_v5 }

// kernel: tile.18
= control target key start
LH: loop header
LB: loop body
LE: loop exit
PB: predicated region body
PF: predicated region fallthrough
CT: control target
= control target key end

     0   :  { %s22_s0 = inlined_call_operand.vmem [shape: f32[32], index: 0, kind: input, shape index: {}]   ;;  %s23_s1 = inlined_call_operand.vmem [shape: f32[4,32], index: 1, kind: output, shape index: {}]  }
   0x1   :  { %v4_v0 = vld [vmem:[%s22_s0] ss:$0 sm:$0xff] }
   0x2   :  { %5 = vst [vmem:[%s23_s1] sm:$0xf] %v4_v0 }

// kernel: tile.19
= control target key start
LH: loop header
LB: loop body
LE: loop exit
PB: predicated region body
PF: predicated region fallthrough
CT: control target
= control target key end

     0   :  { %s37_s8 = smov 32   ;;  %s38_s9 = smov 64   ;;  %vm7_vm0 = vcmask 261120   ;;  %vm13_vm1 = vcmask 1048320   ;;  %vm19_vm2 = vcmask 785920   ;;  %vm25_vm3 = vcmask 523520   ;;  %s55_s0 = inlined_call_operand.vmem [shape: f32[4,32], index: 0, kind: input, shape index: {}]   ;;  %s56_s1 = inlined_call_operand.vmem [shape: f32[1,128], index: 1, kind: output, shape index: {}]  }
   0x1   :  { %v4_v0 = vld [vmem:[%s55_s0] sm:$0xf]  ;;  %s36_s0 = smov 96  }
   0x2   :  { %5 = vst [vmem:[#allocation1] sm:$0xf] %v4_v0 }
   0x9   :  { %v10_v1 = vld [vmem:[#allocation1 + $0x3] sm:$0x1]   ;;  %v22_v2 = vld [vmem:[#allocation1 + $0x1] sm:$0x1]   ;;  %v16_v3 = vld [vmem:[#allocation1 + $0x2] sm:$0x1]  }
   0xa   :  { %11 = vrot.lane.b32.xlu0 %v10_v1, %s36_s0  ;;  %23 = vrot.lane.b32.xlu1 %v22_v2, %s37_s8  ;;  %v6_v4 = vld [vmem:[#allocation1] sm:$0x1]  }
   0xb   :  { %8 = vst.msk [vmem:[#allocation0] sm:$0x1] %vm7_vm0, %v6_v4  }
  0x12   :  { %17 = vrot.lane.b32.xlu0 %v16_v3, %s38_s9 }
  0x7c   :  { %v12_v5 = vpop.permute.xlu0 %11   ;;  %v24_v6 = vpop.permute.xlu1 %23  }
  0x7d   :  { %14 = vst.msk [vmem:[#allocation0] sm:$0x1] %vm13_vm1, %v12_v5  }
  0x84   :  { %v18_v7 = vpop.permute.xlu0 %17  }
  0x85   :  { %20 = vst.msk [vmem:[#allocation0] sm:$0x1] %vm19_vm2, %v18_v7  }
  0x86   :  { %26 = vst.msk [vmem:[#allocation0] sm:$0x1] %vm25_vm3, %v24_v6  }
  0x8d   :  { %v29_v8 = vld [vmem:[#allocation0] sm:$0x1] }
  0x8e   :  { %32 = vst [vmem:[%s56_s1] sm:$0x1] %v29_v8 }

// kernel: fully_connected_output.1
= control target key start
LH: loop header
LB: loop body
LE: loop exit
PB: predicated region body
PF: predicated region fallthrough
CT: control target
= control target key end

     0   :  { %s555_s1 = inlined_call_operand.vmem [shape: f32[128,128], index: 1, kind: input, shape index: {}]   ;;  %s556_s0 = inlined_call_operand.vmem [shape: f32[8,128], index: 0, kind: input, shape index: {}]   ;;  %s557_s2 = inlined_call_operand.vmem [shape: f32[128,256], index: 2, kind: input, shape index: {}]   ;;  %s558_s4 = inlined_call_operand.vmem [shape: f32[256,128], index: 4, kind: input, shape index: {}]   ;;  %s559_s5 = inlined_call_operand.vmem [shape: f32[1,128], index: 5, kind: input, shape index: {}]   ;;  %s560_s3 = inlined_call_operand.vmem [shape: f32[1,256], index: 3, kind: input, shape index: {}]   ;;  %s561_s6 = inlined_call_operand.vmem [shape: f32[8,128], index: 6, kind: output, shape index: {}]  }
   0x1   :  { %v39_v0 = vld [vmem:[%s555_s1 + $0x78] sm:$0xff]  ;;  %v38_v1 = vld [vmem:[%s555_s1 + $0x70] sm:$0xff]  ;;  %v37_v2 = vld [vmem:[%s555_s1 + $0x68] sm:$0xff] }
   0x2   :  { %40 = vmatpush.msra.mxu0 %v39_v0  ;;  %62 = vmatpush.msra.mxu1 %v39_v0  ;;  %v36_v3 = vld [vmem:[%s555_s1 + $0x60] sm:$0xff]  ;;  %v35_v4 = vld [vmem:[%s555_s1 + $0x58] sm:$0xff]  ;;  %v34_v5 = vld [vmem:[%s555_s1 + $0x50] sm:$0xff] }
   0x3   :  { %v33_v6 = vld [vmem:[%s555_s1 + $0x48] sm:$0xff]  ;;  %v32_v7 = vld [vmem:[%s555_s1 + $0x40] sm:$0xff]  ;;  %v31_v8 = vld [vmem:[%s555_s1 + $0x38] sm:$0xff] }
   0x4   :  { %41 = vmatpush.msra.mxu0 %v38_v1  ;;  %63 = vmatpush.msra.mxu1 %v38_v1  ;;  %v30_v9 = vld [vmem:[%s555_s1 + $0x30] sm:$0xff]  ;;  %v29_v10 = vld [vmem:[%s555_s1 + $0x28] sm:$0xff]  ;;  %v28_v11 = vld [vmem:[%s555_s1 + $0x20] sm:$0xff] }
   0x5   :  { %v27_v12 = vld [vmem:[%s555_s1 + $0x18] sm:$0xff]  ;;  %v26_v13 = vld [vmem:[%s555_s1 + $0x10] sm:$0xff]  ;;  %v25_v14 = vld [vmem:[%s555_s1 + $0x8] sm:$0xff] }
   0x6   :  { %42 = vmatpush.msra.mxu0 %v37_v2  ;;  %64 = vmatpush.msra.mxu1 %v37_v2  ;;  %v24_v15 = vld [vmem:[%s555_s1] sm:$0xff]  ;;  %v123_v17 = vld [vmem:[%s557_s2 + $0xf0] sm:$0xff]  ;;  %v124_v18 = vld [vmem:[%s557_s2 + $0xf8] sm:$0xff] }
   0x7   :  { %v344_v16 = vld [vmem:[%s556_s0] sm:$0xff]  ;;  %131 = vmatpush.msra.mxu2 %v123_v17  ;;  %151 = vmatpush.msra.mxu3 %v124_v18  ;;  %v122_v20 = vld [vmem:[%s557_s2 + $0xe8] sm:$0xff]  ;;  %v119_v21 = vld [vmem:[%s557_s2 + $0xd0] sm:$0xff] }
   0x8   :  { %43 = vmatpush.msra.mxu0 %v36_v3  ;;  %65 = vmatpush.msra.mxu1 %v36_v3  ;;  %v121_v19 = vld [vmem:[%s557_s2 + $0xe0] sm:$0xff]  ;;  %v120_v22 = vld [vmem:[%s557_s2 + $0xd8] sm:$0xff]  ;;  %v118_v24 = vld [vmem:[%s557_s2 + $0xc8] sm:$0xff] }
   0x9   :  { %132 = vmatpush.msra.mxu2 %v121_v19  ;;  %152 = vmatpush.msra.mxu3 %v122_v20  ;;  %v117_v23 = vld [vmem:[%s557_s2 + $0xc0] sm:$0xff]  ;;  %v115_v28 = vld [vmem:[%s557_s2 + $0xb0] sm:$0xff]  ;;  %v116_v29 = vld [vmem:[%s557_s2 + $0xb8] sm:$0xff] }
   0xa   :  { %44 = vmatpush.msra.mxu0 %v35_v4  ;;  %66 = vmatpush.msra.mxu1 %v35_v4  ;;  %v113_v30 = vld [vmem:[%s557_s2 + $0xa0] sm:$0xff]  ;;  %v114_v31 = vld [vmem:[%s557_s2 + $0xa8] sm:$0xff]  ;;  %v111_v32 = vld [vmem:[%s557_s2 + $0x90] sm:$0xff] }
   0xb   :  { %133 = vmatpush.msra.mxu2 %v119_v21  ;;  %153 = vmatpush.msra.mxu3 %v120_v22  ;;  %v112_v33 = vld [vmem:[%s557_s2 + $0x98] sm:$0xff]  ;;  %v109_v34 = vld [vmem:[%s557_s2 + $0x80] sm:$0xff]  ;;  %v110_v35 = vld [vmem:[%s557_s2 + $0x88] sm:$0xff] }
   0xc   :  { %45 = vmatpush.msra.mxu0 %v34_v5  ;;  %67 = vmatpush.msra.mxu1 %v34_v5  ;;  %v107_v36 = vld [vmem:[%s557_s2 + $0x70] sm:$0xff]  ;;  %v108_v37 = vld [vmem:[%s557_s2 + $0x78] sm:$0xff]  ;;  %v105_v38 = vld [vmem:[%s557_s2 + $0x60] sm:$0xff] }
   0xd   :  { %134 = vmatpush.msra.mxu2 %v117_v23  ;;  %154 = vmatpush.msra.mxu3 %v118_v24  ;;  %v106_v39 = vld [vmem:[%s557_s2 + $0x68] sm:$0xff]  ;;  %v103_v40 = vld [vmem:[%s557_s2 + $0x50] sm:$0xff]  ;;  %v104_v41 = vld [vmem:[%s557_s2 + $0x58] sm:$0xff] }
   0xe   :  { %46 = vmatpush.msra.mxu0 %v33_v6  ;;  %68 = vmatpush.msra.mxu1 %v33_v6  ;;  %v101_v42 = vld [vmem:[%s557_s2 + $0x40] sm:$0xff]  ;;  %v102_v43 = vld [vmem:[%s557_s2 + $0x48] sm:$0xff]  ;;  %v99_v44 = vld [vmem:[%s557_s2 + $0x30] sm:$0xff] }
   0xf   :  { %135 = vmatpush.msra.mxu2 %v115_v28  ;;  %155 = vmatpush.msra.mxu3 %v116_v29  ;;  %v100_v45 = vld [vmem:[%s557_s2 + $0x38] sm:$0xff]  ;;  %v97_v46 = vld [vmem:[%s557_s2 + $0x20] sm:$0xff]  ;;  %v98_v47 = vld [vmem:[%s557_s2 + $0x28] sm:$0xff] }
  0x10   :  { %47 = vmatpush.msra.mxu0 %v32_v7  ;;  %69 = vmatpush.msra.mxu1 %v32_v7  ;;  %v95_v48 = vld [vmem:[%s557_s2 + $0x10] sm:$0xff]  ;;  %v96_v49 = vld [vmem:[%s557_s2 + $0x18] sm:$0xff]  ;;  %v93_v50 = vld [vmem:[%s557_s2] sm:$0xff] }
  0x11   :  { %136 = vmatpush.msra.mxu2 %v113_v30  ;;  %156 = vmatpush.msra.mxu3 %v114_v31  ;;  %v94_v51 = vld [vmem:[%s557_s2 + $0x8] sm:$0xff]  ;;  %v188_v52 = vld [vmem:[%s558_s4 + $0x78] sm:$0xff]  ;;  %v187_v54 = vld [vmem:[%s558_s4 + $0x70] sm:$0xff] }
  0x12   :  { %48 = vmatpush.msra.mxu0 %v31_v8  ;;  %70 = vmatpush.msra.mxu1 %v31_v8  ;;  %v204_v53 = vld [vmem:[%s558_s4 + $0xf8] sm:$0xff]  ;;  %v203_v55 = vld [vmem:[%s558_s4 + $0xf0] sm:$0xff]  ;;  %v186_v56 = vld [vmem:[%s558_s4 + $0x68] sm:$0xff] }
  0x13   :  { %137 = vmatpush.msra.mxu2 %v111_v32  ;;  %157 = vmatpush.msra.mxu3 %v112_v33  ;;  %v202_v57 = vld [vmem:[%s558_s4 + $0xe8] sm:$0xff]  ;;  %v185_v58 = vld [vmem:[%s558_s4 + $0x60] sm:$0xff]  ;;  %v184_v60 = vld [vmem:[%s558_s4 + $0x58] sm:$0xff] }
  0x14   :  { %49 = vmatpush.msra.mxu0 %v30_v9  ;;  %71 = vmatpush.msra.mxu1 %v30_v9  ;;  %v201_v59 = vld [vmem:[%s558_s4 + $0xe0] sm:$0xff]  ;;  %v200_v61 = vld [vmem:[%s558_s4 + $0xd8] sm:$0xff]  ;;  %v183_v62 = vld [vmem:[%s558_s4 + $0x50] sm:$0xff] }
  0x15   :  { %138 = vmatpush.msra.mxu2 %v109_v34  ;;  %158 = vmatpush.msra.mxu3 %v110_v35  ;;  %v199_v63 = vld [vmem:[%s558_s4 + $0xd0] sm:$0xff]  ;;  %v182_v2 = vld [vmem:[%s558_s4 + $0x48] sm:$0xff]  ;;  %v181_v4 = vld [vmem:[%s558_s4 + $0x40] sm:$0xff] }
  0x16   :  { %50 = vmatpush.msra.mxu0 %v29_v10  ;;  %72 = vmatpush.msra.mxu1 %v29_v10  ;;  %v198_v3 = vld [vmem:[%s558_s4 + $0xc8] sm:$0xff]  ;;  %v197_v5 = vld [vmem:[%s558_s4 + $0xc0] sm:$0xff]  ;;  %v180_v6 = vld [vmem:[%s558_s4 + $0x38] sm:$0xff] }
  0x17   :  { %139 = vmatpush.msra.mxu2 %v107_v36  ;;  %159 = vmatpush.msra.mxu3 %v108_v37  ;;  %v196_v7 = vld [vmem:[%s558_s4 + $0xb8] sm:$0xff]  ;;  %v179_v8 = vld [vmem:[%s558_s4 + $0x30] sm:$0xff]  ;;  %v174_v28 = vld [vmem:[%s558_s4 + $0x8] sm:$0xff] }
  0x18   :  { %51 = vmatpush.msra.mxu0 %v28_v11  ;;  %73 = vmatpush.msra.mxu1 %v28_v11  ;;  %v195_v9 = vld [vmem:[%s558_s4 + $0xb0] sm:$0xff]  ;;  %v178_v11 = vld [vmem:[%s558_s4 + $0x28] sm:$0xff]  ;;  %v176_v18 = vld [vmem:[%s558_s4 + $0x18] sm:$0xff] }
  0x19   :  { %140 = vmatpush.msra.mxu2 %v105_v38  ;;  %160 = vmatpush.msra.mxu3 %v106_v39  ;;  %v192_v19 = vld [vmem:[%s558_s4 + $0x98] sm:$0xff]  ;;  %v173_v29 = vld [vmem:[%s558_s4] sm:$0xff] }
  0x1a   :  { %52 = vmatpush.msra.mxu0 %v27_v12  ;;  %74 = vmatpush.msra.mxu1 %v27_v12  ;;  %v194_v12 = vld [vmem:[%s558_s4 + $0xa8] sm:$0xff]  ;;  %v189_v30 = vld [vmem:[%s558_s4 + $0x80] sm:$0xff] }
  0x1b   :  { %141 = vmatpush.msra.mxu2 %v103_v40  ;;  %161 = vmatpush.msra.mxu3 %v104_v41  ;;  %v125_v31 = vld [vmem:[%s560_s3] sm:$0x3] }
  0x1c   :  { %53 = vmatpush.msra.mxu0 %v26_v13  ;;  %75 = vmatpush.msra.mxu1 %v26_v13  ;;  %v127_v32 = vperm.slane %v125_v31, 0  ;;  %v128_v33 = vperm.slane %v125_v31, 1  ;;  %v255_v40 = vld [vmem:[%s559_s5] ss:$0 sm:$0xff] }
  0x1d   :  { %142 = vmatpush.msra.mxu2 %v101_v42  ;;  %162 = vmatpush.msra.mxu3 %v102_v43 }
  0x1e   :  { %54 = vmatpush.msra.mxu0 %v25_v14  ;;  %76 = vmatpush.msra.mxu1 %v25_v14  ;;  %v177_v14 = vld [vmem:[%s558_s4 + $0x20] sm:$0xff] }
  0x1f   :  { %143 = vmatpush.msra.mxu2 %v99_v44  ;;  %163 = vmatpush.msra.mxu3 %v100_v45 }
  0x20   :  { %55 = vmatpush.msra.mxu0 %v24_v15  ;;  %77 = vmatpush.msra.mxu1 %v24_v15  ;;  %v193_v15 = vld [vmem:[%s558_s4 + $0xa0] sm:$0xff] }
  0x21   :  { %56 = vmatmul.f32.vlgmr.msra.gmra.mxu0 %v344_v16  ;;  %144 = vmatpush.msra.mxu2 %v97_v46 }
  0x22   :  { %164 = vmatpush.msra.mxu3 %v98_v47  ;;  %209 = vmatpush.msrb.mxu0 %v188_v52 }
  0x23   :  { %145 = vmatpush.msra.mxu2 %v95_v48  ;;  %229 = vmatpush.msrb.mxu1 %v204_v53 }
  0x24   :  { %165 = vmatpush.msra.mxu3 %v96_v49  ;;  %210 = vmatpush.msrb.mxu0 %v187_v54 }
  0x25   :  { %146 = vmatpush.msra.mxu2 %v93_v50  ;;  %230 = vmatpush.msrb.mxu1 %v203_v55 }
  0x26   :  { %166 = vmatpush.msra.mxu3 %v94_v51  ;;  %211 = vmatpush.msrb.mxu0 %v186_v56 }
  0x27   :  { %231 = vmatpush.msrb.mxu1 %v202_v57 }
  0x28   :  { %212 = vmatpush.msrb.mxu0 %v185_v58 }
  0x29   :  { %232 = vmatpush.msrb.mxu1 %v201_v59 }
  0x2a   :  { %213 = vmatpush.msrb.mxu0 %v184_v60 }
  0x2b   :  { %233 = vmatpush.msrb.mxu1 %v200_v61 }
  0x2c   :  { %214 = vmatpush.msrb.mxu0 %v183_v62 }
  0x2d   :  { %234 = vmatpush.msrb.mxu1 %v199_v63 }
  0x2e   :  { %215 = vmatpush.msrb.mxu0 %v182_v2 }
  0x2f   :  { %235 = vmatpush.msrb.mxu1 %v198_v3 }
  0x30   :  { %216 = vmatpush.msrb.mxu0 %v181_v4 }
  0x31   :  { %236 = vmatpush.msrb.mxu1 %v197_v5 }
  0x32   :  { %217 = vmatpush.msrb.mxu0 %v180_v6 }
  0x33   :  { %237 = vmatpush.msrb.mxu1 %v196_v7 }
  0x34   :  { %218 = vmatpush.msrb.mxu0 %v179_v8 }
  0x35   :  { %238 = vmatpush.msrb.mxu1 %v195_v9 }
  0x36   :  { %219 = vmatpush.msrb.mxu0 %v178_v11 }
  0x37   :  { %239 = vmatpush.msrb.mxu1 %v194_v12 }
  0x38   :  { %220 = vmatpush.msrb.mxu0 %v177_v14 }
  0x39   :  { %240 = vmatpush.msrb.mxu1 %v193_v15 }
  0x3a   :  { %221 = vmatpush.msrb.mxu0 %v176_v18 }
  0x3b   :  { %241 = vmatpush.msrb.mxu1 %v192_v19 }
  0x9e   :  { %v57_v25 = vpop.f32.mrf.mxu0 }
  0x9f   :  { %v372_v26 = vsub.f32 %v344_v16, %v57_v25  ;;  %v175_v25 = vld [vmem:[%s558_s4 + $0x10] sm:$0xff] }
  0xa0   :  { %222 = vmatpush.msrb.mxu0 %v175_v25 }
  0xa1   :  { %v61_v27 = vmul.f32 %v372_v26, %v372_v26 }
  0xa2   :  { %223 = vmatpush.msrb.mxu0 %v174_v28 }
  0xa3   :  { %78 = vmatmul.f32.vlgmr.msra.gmra.mxu1 %v61_v27  ;;  %v191_v27 = vld [vmem:[%s558_s4 + $0x90] sm:$0xff] }
  0xa4   :  { %242 = vmatpush.msrb.mxu1 %v191_v27  ;;  %224 = vmatpush.msrb.mxu0 %v173_v29 }
 0x120   :  { %v79_v0 = vpop.f32.mrf.mxu1 }
 0x121   :  { %v80_v1 = vadd.f32 1e-05, %v79_v0 }
 0x123   :  { %256 = vrsqrt.f32 %v80_v1  ;;  %vm88_vm1 = vweird.f32 %v80_v1 }
 0x129   :  { %v257_v10 = vpop.eup %256 }
 0x12a   :  { %v83_v13 = vmul.f32 %v257_v10, %v80_v1  ;;  %vm89_vm0 = vweird.f32 %v257_v10 }
 0x12b   :  { %vm90_vm2 = vmor %vm88_vm1, %vm89_vm0 }
 0x12c   :  { %v84_v17 = vmul.f32 %v257_v10, %v83_v13 }
 0x12e   :  { %v85_v20 = vmul.f32 0.5, %v84_v17 }
 0x130   :  { %v86_v21 = vsub.f32 1.5, %v85_v20 }
 0x132   :  { %v87_v22 = vmul.f32 %v257_v10, %v86_v21 }
 0x134   :  { %v91_v23 = vsel %vm90_vm2, %v257_v10, %v87_v22 }
 0x135   :  { %v92_v24 = vmul.f32 %v91_v23, %v372_v26  ;;  %v190_v26 = vld [vmem:[%s558_s4 + $0x88] sm:$0xff] }
 0x136   :  { %243 = vmatpush.msrb.mxu1 %v190_v26 }
 0x137   :  { %147 = vmatmul.f32.vlgmr.msra.gmra.mxu2 %v92_v24  ;;  %167 = vmatmul.f32.vlgmr.msra.gmra.mxu3 %v92_v24 }
 0x138   :  { %244 = vmatpush.msrb.mxu1 %v189_v30 }
 0x1ba   :  { %v148_v34 = vpop.f32.mrf.mxu2  ;;  %v168_v35 = vpop.f32.mrf.mxu3 }
 0x1bb   :  { %v149_v36 = vadd.f32 %v148_v34, %v127_v32  ;;  %v169_v37 = vadd.f32 %v168_v35, %v128_v33 }
 0x1bd   :  { %v171_v38 = vmax.f32 %v149_v36, 0.0  ;;  %v172_v39 = vmax.f32 %v169_v37, 0.0 }
 0x1bf   :  { %225 = vmatmul.f32.vlgmr.msrb.gmra.mxu0 %v171_v38  ;;  %245 = vmatmul.f32.vlgmr.msrb.gmra.mxu1 %v172_v39 }
 0x23c   :  { %v226_v41 = vpop.f32.mrf.mxu0  ;;  %v246_v43 = vpop.f32.mrf.mxu1 }
 0x23d   :  { %v227_v42 = vadd.f32 %v255_v40, %v226_v41 }
 0x23f   :  { %v247_v44 = vadd.f32 %v246_v43, %v227_v42 }
 0x241   :  { %v249_v45 = vadd.f32 %v247_v44, %v344_v16 }
 0x243   :  { %250 = vst [vmem:[%s561_s6] sm:$0xff] %v249_v45 }

</bundles_post_ra>
